<compile_context>
chip_gen: v7x
topology: tpu7x:2x2x1
jax: 0.10.0
libtpu: 0.0.40
codegen_flags: <defaults>
</compile_context>

<pallas_src>
import jax
import jax.numpy as jnp
from jax.experimental import pallas as pl
from jax.experimental.pallas import tpu as pltpu


def mapping_kernel(z_ref, w1_ref, b1_ref, w2_ref, b2_ref, w3_ref, b3_ref, o_ref):
    # z_ref : (tm, z_dim)        current batch tile of noise
    # w*_ref: (in, out)          pre-transposed Linear weights (VMEM-resident)
    # b*_ref: (1, out)           biases as lane-dense rows
    z = z_ref[...].astype(jnp.float32)

    h = jnp.dot(z, w1_ref[...].astype(jnp.float32),
                preferred_element_type=jnp.float32) + b1_ref[...].astype(jnp.float32)
    h = jnp.maximum(h, 0.0)

    h = jnp.dot(h, w2_ref[...].astype(jnp.float32),
                preferred_element_type=jnp.float32) + b2_ref[...].astype(jnp.float32)
    h = jnp.maximum(h, 0.0)

    out = jnp.dot(h, w3_ref[...].astype(jnp.float32),
                  preferred_element_type=jnp.float32) + b3_ref[...].astype(jnp.float32)

    o_ref[...] = out.astype(o_ref.dtype)


def mapping_layers(noise, w1, b1, w2, b2, w3, b3, *, block_rows=256):
    """noise: (N, z_dim). Weights in PyTorch layout:
       w1 (hidden, z_dim), w2 (hidden, hidden), w3 (w_dim, hidden); b* 1-D.
       Returns (N, w_dim)."""
    N, z_dim = noise.shape
    hidden = w1.shape[0]
    w_dim = w3.shape[0]

    # Pre-transpose weights once in the wrapper (free XLA op, avoids in-kernel relayout).
    w1t, w2t, w3t = w1.T, w2.T, w3.T            # (z_dim,h), (h,h), (h,w_dim)
    b1r = b1.reshape(1, hidden)
    b2r = b2.reshape(1, hidden)
    b3r = b3.reshape(1, w_dim)

    # Tile only the batch axis; weights stay resident across grid steps.
    tm = N if N <= block_rows else block_rows
    grid = (pl.cdiv(N, tm),)

    itemsize = jnp.dtype(noise.dtype).itemsize
    flops = 2 * N * (z_dim * hidden + hidden * hidden + hidden * w_dim)
    bytes_accessed = (
        N * z_dim * itemsize
        + (w1.size + w2.size + w3.size + b1.size + b2.size + b3.size)
        * jnp.dtype(w1.dtype).itemsize
        + N * w_dim * itemsize
    )

    return pl.pallas_call(
        mapping_kernel,
        out_shape=jax.ShapeDtypeStruct((N, w_dim), noise.dtype),
        grid_spec=pltpu.PrefetchScalarGridSpec(
            num_scalar_prefetch=0,
            grid=grid,
            in_specs=[
                pl.BlockSpec((tm, z_dim), lambda i: (i, 0)),       # noise tile
                pl.BlockSpec((z_dim, hidden), lambda i: (0, 0)),   # W1^T (resident)
                pl.BlockSpec((1, hidden), lambda i: (0, 0)),       # b1
                pl.BlockSpec((hidden, hidden), lambda i: (0, 0)),  # W2^T (resident)
                pl.BlockSpec((1, hidden), lambda i: (0, 0)),       # b2
                pl.BlockSpec((hidden, w_dim), lambda i: (0, 0)),   # W3^T (resident)
                pl.BlockSpec((1, w_dim), lambda i: (0, 0)),        # b3
            ],
            out_specs=pl.BlockSpec((tm, w_dim), lambda i: (i, 0)),
        ),
        compiler_params=pltpu.CompilerParams(
            dimension_semantics=("parallel",),
        ),
        cost_estimate=pl.CostEstimate(
            flops=flops, transcendentals=0, bytes_accessed=bytes_accessed),
    )(noise, w1t, b1r, w2t, b2r, w3t, b3r)


def mapping_layers_reference(noise, w1, b1, w2, b2, w3, b3):
    h = jax.nn.relu(noise @ w1.T + b1)
    h = jax.nn.relu(h @ w2.T + b2)
    return h @ w3.T + b3


if __name__ == "__main__":
    N = 2
    Z_DIM = 128     # matches z_dim = 128 in the source file
    HIDDEN = 32
    W_DIM = 32

    key = jax.random.PRNGKey(0)
    k_z, k_w1, k_b1, k_w2, k_b2, k_w3, k_b3 = jax.random.split(key, 7)

    noise = jax.random.normal(k_z, (N, Z_DIM), dtype=jnp.float32)

    # PyTorch-style Linear init: uniform(-1/sqrt(fan_in), +1/sqrt(fan_in)).
    bz = 1.0 / (Z_DIM ** 0.5)
    bh = 1.0 / (HIDDEN ** 0.5)
    w1 = jax.random.uniform(k_w1, (HIDDEN, Z_DIM), jnp.float32, -bz, bz)
    b1 = jax.random.uniform(k_b1, (HIDDEN,), jnp.float32, -bz, bz)
    w2 = jax.random.uniform(k_w2, (HIDDEN, HIDDEN), jnp.float32, -bh, bh)
    b2 = jax.random.uniform(k_b2, (HIDDEN,), jnp.float32, -bh, bh)
    w3 = jax.random.uniform(k_w3, (W_DIM, HIDDEN), jnp.float32, -bh, bh)
    b3 = jax.random.uniform(k_b3, (W_DIM,), jnp.float32, -bh, bh)

    out = mapping_layers(noise, w1, b1, w2, b2, w3, b3)
    out = jax.block_until_ready(out)

    ref = mapping_layers_reference(noise, w1, b1, w2, b2, w3, b3)
    assert out.shape == (N, W_DIM)
    assert jnp.allclose(out, ref, atol=1e-4, rtol=1e-4)

    print("KERNEL_OK")
</pallas_src>

<mosaic_0001>
module attributes {stable_mosaic.version = 11 : i64} {
  func.func @mapping_kernel(%arg0: i32, %arg1: memref<2x128xf32, #tpu.memory_space<vmem>>, %arg2: memref<128x32xf32, #tpu.memory_space<vmem>>, %arg3: memref<1x32xf32, #tpu.memory_space<vmem>>, %arg4: memref<32x32xf32, #tpu.memory_space<vmem>>, %arg5: memref<1x32xf32, #tpu.memory_space<vmem>>, %arg6: memref<32x32xf32, #tpu.memory_space<vmem>>, %arg7: memref<1x32xf32, #tpu.memory_space<vmem>>, %arg8: memref<2x32xf32, #tpu.memory_space<vmem>>) attributes {dimension_semantics = [#tpu.dimension_semantics<parallel>], iteration_bounds = array<i64: 1>, scalar_prefetch = 0 : i64, scratch_operands = 0 : i64, tpu.core_type = #tpu.core_type<tc>, window_params = [{transform_indices = @transform_0, window_bounds = array<i64: 2, 128>}, {pipeline_mode = #tpu.pipeline_mode<synchronous>, transform_indices = @transform_1, window_bounds = array<i64: 128, 32>}, {pipeline_mode = #tpu.pipeline_mode<synchronous>, transform_indices = @transform_2, window_bounds = array<i64: 1, 32>}, {pipeline_mode = #tpu.pipeline_mode<synchronous>, transform_indices = @transform_3, window_bounds = array<i64: 32, 32>}, {pipeline_mode = #tpu.pipeline_mode<synchronous>, transform_indices = @transform_4, window_bounds = array<i64: 1, 32>}, {pipeline_mode = #tpu.pipeline_mode<synchronous>, transform_indices = @transform_5, window_bounds = array<i64: 32, 32>}, {pipeline_mode = #tpu.pipeline_mode<synchronous>, transform_indices = @transform_6, window_bounds = array<i64: 1, 32>}, {transform_indices = @transform_7, window_bounds = array<i64: 2, 32>}]} {
    %c0 = arith.constant 0 : index
    %c0_0 = arith.constant 0 : index
    %0 = vector.load %arg1[%c0, %c0_0] : memref<2x128xf32, #tpu.memory_space<vmem>>, vector<2x128xf32>
    %c0_1 = arith.constant 0 : index
    %c0_2 = arith.constant 0 : index
    %1 = vector.load %arg2[%c0_1, %c0_2] : memref<128x32xf32, #tpu.memory_space<vmem>>, vector<128x32xf32>
    %cst = arith.constant dense<0.000000e+00> : vector<2x32xf32>
    %2 = tpu.matmul %0, %1, %cst {dimension_numbers = #tpu.dot_dimension_numbers<[1], [0], [0], [1], [0, 0, 1, 1], [], []>} : vector<2x128xf32>, vector<128x32xf32>, vector<2x32xf32> -> vector<2x32xf32>
    %c0_3 = arith.constant 0 : index
    %c0_4 = arith.constant 0 : index
    %3 = vector.load %arg3[%c0_3, %c0_4] : memref<1x32xf32, #tpu.memory_space<vmem>>, vector<1x32xf32>
    %4 = vector.broadcast %3 : vector<1x32xf32> to vector<2x32xf32>
    %5 = arith.addf %2, %4 : vector<2x32xf32>
    %cst_5 = arith.constant 0.000000e+00 : f32
    %6 = vector.broadcast %cst_5 : f32 to vector<2x32xf32>
    %7 = arith.maximumf %5, %6 : vector<2x32xf32>
    %c0_6 = arith.constant 0 : index
    %c0_7 = arith.constant 0 : index
    %8 = vector.load %arg4[%c0_6, %c0_7] : memref<32x32xf32, #tpu.memory_space<vmem>>, vector<32x32xf32>
    %cst_8 = arith.constant dense<0.000000e+00> : vector<2x32xf32>
    %9 = tpu.matmul %7, %8, %cst_8 {dimension_numbers = #tpu.dot_dimension_numbers<[1], [0], [0], [1], [0, 0, 1, 1], [], []>} : vector<2x32xf32>, vector<32x32xf32>, vector<2x32xf32> -> vector<2x32xf32>
    %c0_9 = arith.constant 0 : index
    %c0_10 = arith.constant 0 : index
    %10 = vector.load %arg5[%c0_9, %c0_10] : memref<1x32xf32, #tpu.memory_space<vmem>>, vector<1x32xf32>
    %11 = vector.broadcast %10 : vector<1x32xf32> to vector<2x32xf32>
    %12 = arith.addf %9, %11 : vector<2x32xf32>
    %cst_11 = arith.constant 0.000000e+00 : f32
    %13 = vector.broadcast %cst_11 : f32 to vector<2x32xf32>
    %14 = arith.maximumf %12, %13 : vector<2x32xf32>
    %c0_12 = arith.constant 0 : index
    %c0_13 = arith.constant 0 : index
    %15 = vector.load %arg6[%c0_12, %c0_13] : memref<32x32xf32, #tpu.memory_space<vmem>>, vector<32x32xf32>
    %cst_14 = arith.constant dense<0.000000e+00> : vector<2x32xf32>
    %16 = tpu.matmul %14, %15, %cst_14 {dimension_numbers = #tpu.dot_dimension_numbers<[1], [0], [0], [1], [0, 0, 1, 1], [], []>} : vector<2x32xf32>, vector<32x32xf32>, vector<2x32xf32> -> vector<2x32xf32>
    %c0_15 = arith.constant 0 : index
    %c0_16 = arith.constant 0 : index
    %17 = vector.load %arg7[%c0_15, %c0_16] : memref<1x32xf32, #tpu.memory_space<vmem>>, vector<1x32xf32>
    %18 = vector.broadcast %17 : vector<1x32xf32> to vector<2x32xf32>
    %19 = arith.addf %16, %18 : vector<2x32xf32>
    %c0_17 = arith.constant 0 : index
    %c0_18 = arith.constant 0 : index
    %20 = vector.load %arg8[%c0_17, %c0_18] : memref<2x32xf32, #tpu.memory_space<vmem>>, vector<2x32xf32>
    tpu.vector_store %arg8[%c0_17, %c0_18], %19 {strides = array<i32>} : memref<2x32xf32, #tpu.memory_space<vmem>>, vector<2x32xf32>,
    return
  }
  func.func @transform_0(%arg0: i32) -> (i32, i32) {
    %c0_i32 = arith.constant 0 : i32
    %c0_i32_0 = arith.constant 0 : i32
    return %arg0, %c0_i32 : i32, i32
  }
  func.func @transform_1(%arg0: i32) -> (i32, i32) {
    %c0_i32 = arith.constant 0 : i32
    %c0_i32_0 = arith.constant 0 : i32
    %c0_i32_1 = arith.constant 0 : i32
    return %c0_i32, %c0_i32_0 : i32, i32
  }
  func.func @transform_2(%arg0: i32) -> (i32, i32) {
    %c0_i32 = arith.constant 0 : i32
    %c0_i32_0 = arith.constant 0 : i32
    %c0_i32_1 = arith.constant 0 : i32
    return %c0_i32, %c0_i32_0 : i32, i32
  }
  func.func @transform_3(%arg0: i32) -> (i32, i32) {
    %c0_i32 = arith.constant 0 : i32
    %c0_i32_0 = arith.constant 0 : i32
    %c0_i32_1 = arith.constant 0 : i32
    return %c0_i32, %c0_i32_0 : i32, i32
  }
  func.func @transform_4(%arg0: i32) -> (i32, i32) {
    %c0_i32 = arith.constant 0 : i32
    %c0_i32_0 = arith.constant 0 : i32
    %c0_i32_1 = arith.constant 0 : i32
    return %c0_i32, %c0_i32_0 : i32, i32
  }
  func.func @transform_5(%arg0: i32) -> (i32, i32) {
    %c0_i32 = arith.constant 0 : i32
    %c0_i32_0 = arith.constant 0 : i32
    %c0_i32_1 = arith.constant 0 : i32
    return %c0_i32, %c0_i32_0 : i32, i32
  }
  func.func @transform_6(%arg0: i32) -> (i32, i32) {
    %c0_i32 = arith.constant 0 : i32
    %c0_i32_0 = arith.constant 0 : i32
    %c0_i32_1 = arith.constant 0 : i32
    return %c0_i32, %c0_i32_0 : i32, i32
  }
  func.func @transform_7(%arg0: i32) -> (i32, i32) {
    %c0_i32 = arith.constant 0 : i32
    %c0_i32_0 = arith.constant 0 : i32
    return %arg0, %c0_i32 : i32, i32
  }
}

</mosaic_0001>

<bundles_post_ra>
// kernel: tpu_custom_call.1
= control target key start
LH: loop header
LB: loop body
LE: loop exit
PB: predicated region body
PF: predicated region fallthrough
CT: control target
= control target key end

     0   :  { %v461_v3 = vmov 0.0|0.0   ;;  %vm462_vm0 = vmmov 0   ;;  %v463_v6 = vmov 0.0   ;;  %s618_s0 = inlined_call_operand.vmem [shape: f32[2,128], index: 0, kind: input, shape index: {}]   ;;  %s619_s1 = inlined_call_operand.vmem [shape: f32[128,32], index: 1, kind: input, shape index: {}]   ;;  %s620_s2 = inlined_call_operand.vmem [shape: f32[1,32], index: 2, kind: input, shape index: {}]   ;;  %s621_s3 = inlined_call_operand.vmem [shape: f32[32,32], index: 3, kind: input, shape index: {}]   ;;  %s622_s4 = inlined_call_operand.vmem [shape: f32[1,32], index: 4, kind: input, shape index: {}]   ;;  %s623_s5 = inlined_call_operand.vmem [shape: f32[32,32], index: 5, kind: input, shape index: {}]   ;;  %s624_s6 = inlined_call_operand.vmem [shape: f32[1,32], index: 6, kind: input, shape index: {}]   ;;  %s625_s7 = inlined_call_operand.hbm [shape: f32[2,32], index: 7, kind: output, shape index: {}]  }
   0x1   :  { %v28_v0 = vld [vmem:[%s619_s1] sm:$0xff]  ;;  %v29_v1 = vld [vmem:[%s619_s1 + $0x8] sm:$0xff]  ;;  %v30_v2 = vld [vmem:[%s619_s1 + $0x10] sm:$0xff]  ;;  %397 = vmatprep.subr.bf16.mxu0 %v461_v3  ;;  %372 = vmatprep.mubr.msk.f32.mxu0 %vm462_vm0, %v463_v6 }
   0x2   :  { %v398_v4 = vpack.c.bf16 %v29_v1, %v28_v0  ;;  %v31_v5 = vld [vmem:[%s619_s1 + $0x18] sm:$0xff]  ;;  %421 = vmatprep.subr.bf16.mxu1 %v461_v3  ;;  %383 = vmatprep.mubr.msk.f32.mxu1 %vm462_vm0, %v463_v6  ;;  %v32_v8 = vld [vmem:[%s619_s1 + $0x20] sm:$0xff]  ;;  %v33_v9 = vld [vmem:[%s619_s1 + $0x28] sm:$0xff] }
   0x3   :  { %v401_v7 = vpack.c.bf16 %v31_v5, %v30_v2  ;;  %v122_v10 = vld [vmem:[%s621_s3] sm:$0xff]  ;;  %v123_v11 = vld [vmem:[%s621_s3 + $0x8] sm:$0xff] }
   0x4   :  { %399 = vmatpush3.bf16.msra.mxu0 %v398_v4 }
   0x5   :  { %400 = vmatprep.subr.bf16.mxu0 %v461_v3 }
   0x6   :  { %12 = vsyncpa [#allocation3], 0  ;;  %v404_v12 = vpack.c.bf16 %v33_v9, %v32_v8  ;;  %v422_v13 = vpack.c.bf16 %v123_v11, %v122_v10  ;;  %v34_v14 = vld [vmem:[%s619_s1 + $0x30] sm:$0xff]  ;;  %v35_v15 = vld [vmem:[%s619_s1 + $0x38] sm:$0xff]  ;;  %vm133_vm1 = vcmask 261120   ;;  %s464_s30 = smov [#allocation2]  }
   0x7   :  { %v407_v16 = vpack.c.bf16 %v35_v15, %v34_v14  ;;  %v36_v17 = vld [vmem:[%s619_s1 + $0x40] sm:$0xff]  ;;  %v37_v18 = vld [vmem:[%s619_s1 + $0x48] sm:$0xff]  ;;  %v38_v20 = vld [vmem:[%s619_s1 + $0x50] sm:$0xff]  ;;  %s300_s8 = sshll.u32 %s464_s30, 4  ;;  %vm292_vm2 = vcmask 254976   ;;  %s301_s8 = int_to_ptr.vmem [resolvable:$true] %s300_s8 }
   0x8   :  { %402 = vmatpush3.bf16.msra.mxu0 %v401_v7  ;;  %423 = vmatpush3.bf16.msra.mxu1 %v422_v13  ;;  %v410_v19 = vpack.c.bf16 %v37_v18, %v36_v17  ;;  %v39_v21 = vld [vmem:[%s619_s1 + $0x58] sm:$0xff]  ;;  %v40_v23 = vld [vmem:[%s619_s1 + $0x60] sm:$0xff]  ;;  %v41_v24 = vld [vmem:[%s619_s1 + $0x68] sm:$0xff]  ;;  %p442_p1 = scmp.lt.s32.totalorder %s301_s8, %s301_s8 }
   0x9   :  { %403 = vmatprep.subr.bf16.mxu0 %v461_v3  ;;  %424 = vmatprep.subr.bf16.mxu1 %v461_v3  ;;  %v413_v22 = vpack.c.bf16 %v39_v21, %v38_v20  ;;  %v416_v25 = vpack.c.bf16 %v41_v24, %v40_v23  ;;  %v42_v26 = vld [vmem:[%s619_s1 + $0x70] sm:$0xff]  ;;  %v43_v27 = vld [vmem:[%s619_s1 + $0x78] sm:$0xff]  ;;  %v27_v29 = vld [vmem:[%s618_s0] sm:$0x3] }
   0xa   :  { %v419_v28 = vpack.c.bf16 %v43_v27, %v42_v26  ;;  %v124_v30 = vld [vmem:[%s621_s3 + $0x10] sm:$0xff]  ;;  %v125_v31 = vld [vmem:[%s621_s3 + $0x18] sm:$0xff]  ;;  %v308_v33 = vld [vmem:[%s620_s2] ss:$0 sm:$0xff] }
   0xb   :  { %v425_v32 = vpack.c.bf16 %v125_v31, %v124_v30  ;;  %v208_v34 = vld [vmem:[%s623_s5] sm:$0xff]  ;;  %v209_v35 = vld [vmem:[%s623_s5 + $0x8] sm:$0xff]  ;;  %v210_v41 = vld [vmem:[%s623_s5 + $0x10] sm:$0xff] }
   0xc   :  { %405 = vmatpush3.bf16.msra.mxu0 %v404_v12  ;;  %v428_v39 = vpack.c.bf16 %v209_v35, %v208_v34  ;;  %v211_v42 = vld [vmem:[%s623_s5 + $0x18] sm:$0xff]  ;;  %v309_v44 = vld [vmem:[%s622_s4] ss:$0 sm:$0xff]  ;;  %s437_s5 = scalar_lea.vmem %s301_s8, 32 }
   0xd   :  { %406 = vmatprep.subr.bf16.mxu0 %v461_v3  ;;  %426 = vmatpush3.bf16.msra.mxu1 %v425_v32  ;;  %v431_v43 = vpack.c.bf16 %v211_v42, %v210_v41  ;;  %v311_v49 = vld [vmem:[%s624_s6] ss:$0 sm:$0xff]  ;;  %p438_p0 = scmp.ne.s32.totalorder %s301_s8, %s437_s5  ;;  %p443_p2 = scmp.lt.s32.totalorder %s437_s5, %s437_s5 }
   0xe   :  { %427 = vmatprep.subr.bf16.mxu1 %v461_v3 }
   0xf   :  { %p444_p3 = por %p443_p2, %p442_p1 }
  0x10   :  { %408 = vmatpush3.bf16.msra.mxu0 %v407_v16 }
  0x11   :  { %409 = vmatprep.subr.bf16.mxu0 %v461_v3  ;;  %p445_p4 = pnand %p444_p3, %p438_p0 }
  0x14   :  { %411 = vmatpush3.bf16.msra.mxu0 %v410_v19 }
  0x15   :  { %412 = vmatprep.subr.bf16.mxu0 %v461_v3 }
  0x18   :  { %414 = vmatpush3.bf16.msra.mxu0 %v413_v22 }
  0x19   :  { %415 = vmatprep.subr.bf16.mxu0 %v461_v3 }
  0x1c   :  { %417 = vmatpush3.bf16.msra.mxu0 %v416_v25 }
  0x1d   :  { %418 = vmatprep.subr.bf16.mxu0 %v461_v3 }
  0x20   :  { %420 = vmatpush3.bf16.msra.mxu0 %v419_v28 }
  0x23   :  { %373 = vmatmul.mubr.f32.vlgmr.msra.gmra.mrb[0].mxu0 %v27_v29 }
  0xf6   :  { %v117_v36 = vpop.f32.mrb[0].mxu0 }
  0xf7   :  { %v118_v37 = vadd.f32 %v308_v33, %v117_v36  ;;  %v374_v38 = vpop.f32.mrb[1].mxu0 }
  0xf9   :  { %v121_v40 = vmax.f32 %v118_v37, 0.0 }
  0xfb   :  { %384 = vmatmul.mubr.msk.f32.vlgmr.msra.gmra.mrb[0].mxu1 %vm133_vm1, %v121_v40 }
  0xfc   :  { %429 = vmatpush3.bf16.msra.mxu1 %v428_v39  ;;  %394 = vmatprep.mubr.msk.f32.mxu1 %vm462_vm0, %v463_v6 }
  0xfd   :  { %430 = vmatprep.subr.bf16.mxu1 %v461_v3 }
 0x100   :  { %432 = vmatpush3.bf16.msra.mxu1 %v431_v43 }
 0x1ce   :  { %v203_v45 = vpop.f32.mrb[0].mxu1 }
 0x1cf   :  { %v204_v46 = vadd.f32 %v309_v44, %v203_v45  ;;  %v385_v47 = vpop.f32.mrb[1].mxu1 }
 0x1d1   :  { %v207_v48 = vmax.f32 %v204_v46, 0.0 }
 0x1d3   :  { %395 = vmatmul.mubr.msk.f32.vlgmr.msra.gmra.mrb[2].mxu1 %vm133_vm1, %v207_v48 }
 0x2a6   :  { %v288_v50 = vpop.f32.mrb[2].mxu1 }
 0x2a7   :  { %v289_v51 = vadd.f32 %v311_v49, %v288_v50  ;;  %v396_v52 = vpop.f32.mrb[3].mxu1 }
 0x2a9   :  { %293 = vst.msk [vmem:[#allocation2] sm:$0x3] %vm292_vm2, %v289_v51 }
 0x2aa   :  { %448 = shalt.err (!%p445_p4)
}
 0x2ab   :  { %s449_s10 = scalar_lea.hbm %s625_s7, 32 }
 0x2ac   :  { %p450_p5 = scmp.ne.s32.totalorder %s625_s7, %s449_s10  ;;  %p453_p6 = scmp.lt.u32.totalorder %s449_s10, %s625_s7 }
 0x2ae   :  { %p455_p7 = pnand %p453_p6, %p450_p5 }
 0x2b0   :  { %458 = shalt.err (!%p455_p7)
}
 0x2b1   :  { %303 = dma.vmem_to_hbm [thread:$0]  %s301_s8, 32, %s625_s7, [#allocation3]  }
 0x2b2   :  { %459 = dma.done.wait [#allocation3], 32  }
 0x2b3   :  { %460 = vsyncadd [#allocation3], 4294967264 }
 0x2b4   :  { %307 = vsyncpa [#allocation3], 1 }

</bundles_post_ra>
